<compile_context>
chip_gen: v5e
topology: v5e:2x2
jax: 0.10.0
libtpu: 0.0.40
codegen_flags: <defaults>
</compile_context>

<pallas_src>
import numpy as np
import jax
import jax.numpy as jnp
from jax import lax
from jax.experimental import pallas as pl
from jax.experimental.pallas import tpu as pltpu


def _round_up(x, m):
    return (x + m - 1) // m * m


def _istft_synthesis_constants(n_fft, hop, T):
    """Weight-independent istft pieces, built host-side in f64 (fold at init)."""
    m = np.arange(n_fft, dtype=np.float64)
    k = np.arange(1, n_fft // 2 + 1, dtype=np.float64)[:, None]   # bins 1..n/2
    ang = 2.0 * np.pi * k * m[None, :] / n_fft
    ck = np.where(k < n_fft // 2, 2.0, 1.0)
    d_re = ck * np.cos(ang) / np.sqrt(n_fft)      # real-part channels (ortho irfft)
    d_im = -ck * np.sin(ang) / np.sqrt(n_fft)     # imag-part channels
    d_im[-1, :] = 0.0                             # irfft ignores imag(Nyquist)
    basis = np.zeros((n_fft, n_fft), dtype=np.float64)
    basis[0::2] = d_re                            # conv channel 2j   -> Re(bin j+1)
    basis[1::2] = d_im                            # conv channel 2j+1 -> Im(bin j+1)
    win = np.sin(np.pi * m / n_fft) ** 2          # periodic hann window
    basis_w = basis * win[None, :]                # irfft + synthesis window

    # squared-window overlap-add envelope over all T+2 frames (as torch.istft).
    n_frames = T + 2
    full_len = n_fft + hop * (n_frames - 1)
    env = np.zeros(full_len, dtype=np.float64)
    for t in range(n_frames):
        env[t * hop:t * hop + n_fft] += win * win
    off = n_fft // 2 + hop // 2                   # center trim + DecodeSTFT pad trim
    inv_env = 1.0 / env[off:off + T * hop]
    return basis_w, inv_env


def decode_stft(z, weight, bias, *, n_fft, hop, padding, matmul_dtype=jnp.bfloat16):
    """z: (N, C, T); weight: (C, n_fft, 1) ConvTranspose1d weight; bias: (n_fft,).
    Returns (N, T*hop) float32, matching PyTorch DecodeSTFT.forward."""
    N, C, T = z.shape
    assert weight.shape == (C, n_fft, 1) and bias.shape == (n_fft,)
    assert padding == hop // 2 and hop % 2 == 0
    # TODO(synk): general hop (hop not dividing n_fft, e.g. the 512/160 default)
    #             needs a per-frame dynamic-offset overlap-add path.
    assert n_fft % hop == 0, "kernel assumes hop | n_fft"
    R = n_fft // hop
    assert R % 2 == 0 and T % R == 0
    L = T * hop
    I = L // n_fft                 # output rows of n_fft samples each
    RI = R * I                     # == T
    r_half = R // 2
    lane_pad = n_fft
    rows = _round_up(T + R, 8)     # OLA workspace rows (frame axis + zero margins)

    # ---- fold conv-transpose weight + irfft basis + window (tiny, host-side) ---
    basis_w, inv_env = _istft_synthesis_constants(n_fft, hop, T)
    w2d = np.asarray(weight, dtype=np.float64)[:, :, 0]
    mw = jnp.asarray(w2d @ basis_w, dtype=matmul_dtype)                     # (C, n_fft)
    dw = jnp.asarray((np.asarray(bias, dtype=np.float64) @ basis_w)[None, :],
                     dtype=jnp.float32)                                     # (1, n_fft)
    env2 = jnp.asarray(inv_env.reshape(I, n_fft), dtype=jnp.float32)        # (I, n_fft)

    def kernel(z_ref, mw_ref, dw_ref, env_ref, o_ref, scr_ref):
        # (1) 1x1 conv-transpose + ortho irfft + hann window, all in one matmul:
        #     frames[t, m] = sum_c z[c, t] * Mw[c, m] + dw[m]   (real frames t'=t+1)
        zb = z_ref[0].astype(mw_ref.dtype)                       # (C, T), cast in VMEM
        frames = lax.dot_general(zb, mw_ref[...],
                                 (((0,), (0,)), ((), ())),
                                 preferred_element_type=jnp.float32)  # (T, n_fft)
        frames = frames + dw_ref[...]

        # (2) zero-padded frame workspace: row u = t' + R/2 - 1 (so the zero
        #     spectrogram pad frames / margins are zero rows), lanes padded by
        #     n_fft on each side so every OLA shift is a plain static slice.
        scr_ref[...] = jnp.zeros_like(scr_ref)
        scr_ref[r_half:r_half + T, lane_pad:lane_pad + n_fft] = frames

        # (3) overlap-add.  For output row i (samples j = i*n_fft + m):
        #       x_pre[i, m] = sum_{v=0}^{2R-1} scr[R*i + v, lane_pad + m + s_v],
        #       s_v = n_fft - hop/2 - v*hop.
        #     Accumulate the 2R lane-shifted slabs over all rows, then pick every
        #     R-th row with a constant 0/1 selection matmul (keeps the kernel free
        #     of strided loads and sublane<->lane reshapes).
        acc = jnp.zeros((RI, n_fft), jnp.float32)
        for v in range(2 * R):
            s_v = n_fft - hop // 2 - v * hop
            acc = acc + scr_ref[pl.ds(v, RI), pl.ds(lane_pad + s_v, n_fft)]
        row = lax.broadcasted_iota(jnp.int32, (I, RI), 0)
        col = lax.broadcasted_iota(jnp.int32, (I, RI), 1)
        sel = (col == R * row).astype(jnp.float32)               # (I, RI) one-hot
        x_pre = jnp.dot(sel, acc, preferred_element_type=jnp.float32)   # (I, n_fft)

        # (4) istft envelope normalization; center + hop/2 trims are baked into
        #     env_ref's offset.  Lane-dense (I, 128-multiple) store.
        o_ref[0] = (x_pre * env_ref[...]).astype(o_ref.dtype)

    out = pl.pallas_call(
        kernel,
        out_shape=jax.ShapeDtypeStruct((N, I, n_fft), jnp.float32),
        grid_spec=pltpu.PrefetchScalarGridSpec(
            num_scalar_prefetch=0,
            grid=(N,),
            in_specs=[
                pl.BlockSpec((1, C, T), lambda n: (n, 0, 0)),
                pl.BlockSpec((C, n_fft), lambda n: (0, 0)),
                pl.BlockSpec((1, n_fft), lambda n: (0, 0)),
                pl.BlockSpec((I, n_fft), lambda n: (0, 0)),
            ],
            out_specs=pl.BlockSpec((1, I, n_fft), lambda n: (n, 0, 0)),
            scratch_shapes=[pltpu.VMEM((rows, 3 * n_fft), jnp.float32)],
        ),
        compiler_params=pltpu.CompilerParams(
            dimension_semantics=("parallel",)),
    )(z, mw, dw, env2)

    # (N, I, n_fft) -> (N, L): trivial minor-dim merge (no transpose, negligible).
    return out.reshape(N, L)


def decode_stft_reference(z, weight, bias, *, n_fft, hop, padding):
    """Pure-JAX mirror of PyTorch DecodeSTFT.forward (independent istft path)."""
    N, C, T = z.shape
    m = jnp.arange(n_fft)
    win = jnp.sin(jnp.pi * m / n_fft) ** 2                      # periodic hann
    u = jnp.einsum('nct,cf->nft', z, weight[:, :, 0]) + bias[None, :, None]
    spec = u[:, 0::2, :] + 1j * u[:, 1::2, :]                   # (N, n_fft//2, T)
    S = jnp.zeros((N, n_fft // 2 + 1, T + 2), jnp.complex64)
    S = S.at[:, 1:, 1:T + 1].set(spec)
    frames = jnp.fft.irfft(S, n=n_fft, axis=1, norm='ortho')    # (N, n_fft, T+2)
    frames = jnp.transpose(frames, (0, 2, 1)) * win[None, None, :]
    n_frames = T + 2
    full_len = n_fft + hop * (n_frames - 1)
    y = jnp.zeros((N, full_len), jnp.float32)
    env = jnp.zeros((full_len,), jnp.float32)
    for t in range(n_frames):
        y = y.at[:, t * hop:t * hop + n_fft].add(frames[:, t, :])
        env = env.at[t * hop:t * hop + n_fft].add(win * win)
    start, end = n_fft // 2, full_len - n_fft // 2
    y = y[:, start:end] / env[start:end][None, :]
    return y[:, padding:-padding]


if __name__ == "__main__":
    # Small config consistent with EmbeddingSTFT/DecodeSTFT:
    #   T = wave_length // hop, conv-transpose maps num_features -> n_fft channels.
    N = 2
    wave_length = 2048
    window_size = 128           # n_fft
    hop_size = 32
    num_features = 128
    padding = hop_size // 2
    T = wave_length // hop_size

    key = jax.random.PRNGKey(0)
    kz, kw, kb = jax.random.split(key, 3)
    z = jax.random.normal(kz, (N, num_features, T), jnp.float32)
    weight = jax.random.normal(kw, (num_features, window_size, 1), jnp.float32) * 0.05
    bias = jax.random.normal(kb, (window_size,), jnp.float32) * 0.05

    out = decode_stft(z, weight, bias, n_fft=window_size, hop=hop_size, padding=padding)
    out = jax.block_until_ready(out)
    assert out.shape == (N, wave_length), out.shape

    ref = decode_stft_reference(z, weight, bias,
                                n_fft=window_size, hop=hop_size, padding=padding)
    ref = jax.block_until_ready(ref)
    err = float(jnp.max(jnp.abs(out - ref)))
    # bf16 matmul operands (f32 accumulation) -> tolerance ~1e-2.
    assert err < 2e-2, err

    print("KERNEL_OK")
</pallas_src>

<mosaic_0001>
module attributes {stable_mosaic.version = 11 : i64} {
  func.func @kernel(%arg0: i32, %arg1: memref<1x128x64xf32, #tpu.memory_space<vmem>>, %arg2: memref<128x128xbf16, #tpu.memory_space<vmem>>, %arg3: memref<1x128xf32, #tpu.memory_space<vmem>>, %arg4: memref<16x128xf32, #tpu.memory_space<vmem>>, %arg5: memref<1x16x128xf32, #tpu.memory_space<vmem>>, %arg6: memref<72x384xf32, #tpu.memory_space<vmem>>) attributes {dimension_semantics = [#tpu.dimension_semantics<parallel>], iteration_bounds = array<i64: 2>, scalar_prefetch = 0 : i64, scratch_operands = 1 : i64, tpu.core_type = #tpu.core_type<tc>, window_params = [{transform_indices = @transform_0, window_bounds = array<i64: 1, 128, 64>}, {pipeline_mode = #tpu.pipeline_mode<synchronous>, transform_indices = @transform_1, window_bounds = array<i64: 128, 128>}, {pipeline_mode = #tpu.pipeline_mode<synchronous>, transform_indices = @transform_2, window_bounds = array<i64: 1, 128>}, {pipeline_mode = #tpu.pipeline_mode<synchronous>, transform_indices = @transform_3, window_bounds = array<i64: 16, 128>}, {transform_indices = @transform_4, window_bounds = array<i64: 1, 16, 128>}]} {
    %c0 = arith.constant 0 : index
    %c0_0 = arith.constant 0 : index
    %c0_1 = arith.constant 0 : index
    %0 = vector.load %arg1[%c0, %c0_0, %c0_1] : memref<1x128x64xf32, #tpu.memory_space<vmem>>, vector<1x128x64xf32>
    %1 = vector.shape_cast %0 : vector<1x128x64xf32> to vector<128x64xf32>
    %2 = arith.truncf %1 : vector<128x64xf32> to vector<128x64xbf16>
    %c0_2 = arith.constant 0 : index
    %c0_3 = arith.constant 0 : index
    %3 = vector.load %arg2[%c0_2, %c0_3] : memref<128x128xbf16, #tpu.memory_space<vmem>>, vector<128x128xbf16>
    %cst = arith.constant dense<0.000000e+00> : vector<64x128xf32>
    %4 = tpu.matmul %2, %3, %cst {dimension_numbers = #tpu.dot_dimension_numbers<[0], [0], [1], [1], [0, 1, 1, 1], [], []>} : vector<128x64xbf16>, vector<128x128xbf16>, vector<64x128xf32> -> vector<64x128xf32>
    %c0_4 = arith.constant 0 : index
    %c0_5 = arith.constant 0 : index
    %5 = vector.load %arg3[%c0_4, %c0_5] : memref<1x128xf32, #tpu.memory_space<vmem>>, vector<1x128xf32>
    %6 = vector.broadcast %5 : vector<1x128xf32> to vector<64x128xf32>
    %7 = arith.addf %4, %6 : vector<64x128xf32>
    %cst_6 = arith.constant 0.000000e+00 : f32
    %8 = vector.broadcast %cst_6 : f32 to vector<72x384xf32>
    %c0_7 = arith.constant 0 : index
    %c0_8 = arith.constant 0 : index
    %9 = vector.load %arg6[%c0_7, %c0_8] : memref<72x384xf32, #tpu.memory_space<vmem>>, vector<72x384xf32>
    tpu.vector_store %arg6[%c0_7, %c0_8], %8 {strides = array<i32>} : memref<72x384xf32, #tpu.memory_space<vmem>>, vector<72x384xf32>,
    %c2 = arith.constant 2 : index
    %c128 = arith.constant 128 : index
    %10 = vector.load %arg6[%c2, %c128] : memref<72x384xf32, #tpu.memory_space<vmem>>, vector<64x128xf32>
    tpu.vector_store %arg6[%c2, %c128], %7 {strides = array<i32>} : memref<72x384xf32, #tpu.memory_space<vmem>>, vector<64x128xf32>,
    %cst_9 = arith.constant 0.000000e+00 : f32
    %11 = vector.broadcast %cst_9 : f32 to vector<64x128xf32>
    %c0_10 = arith.constant 0 : index
    %c240 = arith.constant 240 : index
    %12 = vector.load %arg6[%c0_10, %c240] : memref<72x384xf32, #tpu.memory_space<vmem>>, vector<64x128xf32>
    %13 = arith.addf %11, %12 : vector<64x128xf32>
    %c1 = arith.constant 1 : index
    %c208 = arith.constant 208 : index
    %14 = vector.load %arg6[%c1, %c208] : memref<72x384xf32, #tpu.memory_space<vmem>>, vector<64x128xf32>
    %15 = arith.addf %13, %14 : vector<64x128xf32>
    %c2_11 = arith.constant 2 : index
    %c176 = arith.constant 176 : index
    %16 = vector.load %arg6[%c2_11, %c176] : memref<72x384xf32, #tpu.memory_space<vmem>>, vector<64x128xf32>
    %17 = arith.addf %15, %16 : vector<64x128xf32>
    %c3 = arith.constant 3 : index
    %c144 = arith.constant 144 : index
    %18 = vector.load %arg6[%c3, %c144] : memref<72x384xf32, #tpu.memory_space<vmem>>, vector<64x128xf32>
    %19 = arith.addf %17, %18 : vector<64x128xf32>
    %c4 = arith.constant 4 : index
    %c112 = arith.constant 112 : index
    %20 = vector.load %arg6[%c4, %c112] : memref<72x384xf32, #tpu.memory_space<vmem>>, vector<64x128xf32>
    %21 = arith.addf %19, %20 : vector<64x128xf32>
    %c5 = arith.constant 5 : index
    %c80 = arith.constant 80 : index
    %22 = vector.load %arg6[%c5, %c80] : memref<72x384xf32, #tpu.memory_space<vmem>>, vector<64x128xf32>
    %23 = arith.addf %21, %22 : vector<64x128xf32>
    %c6 = arith.constant 6 : index
    %c48 = arith.constant 48 : index
    %24 = vector.load %arg6[%c6, %c48] : memref<72x384xf32, #tpu.memory_space<vmem>>, vector<64x128xf32>
    %25 = arith.addf %23, %24 : vector<64x128xf32>
    %c7 = arith.constant 7 : index
    %c16 = arith.constant 16 : index
    %26 = vector.load %arg6[%c7, %c16] : memref<72x384xf32, #tpu.memory_space<vmem>>, vector<64x128xf32>
    %27 = arith.addf %25, %26 : vector<64x128xf32>
    %28 = tpu.iota {dimensions = array<i32: 0>} : vector<16x64xi32>
    %29 = tpu.iota {dimensions = array<i32: 1>} : vector<16x64xi32>
    %c4_i32 = arith.constant 4 : i32
    %30 = vector.broadcast %c4_i32 : i32 to vector<16x64xi32>
    %31 = arith.muli %30, %28 : vector<16x64xi32>
    %32 = arith.cmpi eq, %29, %31 : vector<16x64xi32>
    %33 = arith.extui %32 : vector<16x64xi1> to vector<16x64xi32>
    %34 = arith.sitofp %33 : vector<16x64xi32> to vector<16x64xf32>
    %cst_12 = arith.constant dense<0.000000e+00> : vector<16x128xf32>
    %35 = tpu.matmul %34, %27, %cst_12 {dimension_numbers = #tpu.dot_dimension_numbers<[1], [0], [0], [1], [0, 0, 1, 1], [], []>} : vector<16x64xf32>, vector<64x128xf32>, vector<16x128xf32> -> vector<16x128xf32>
    %c0_13 = arith.constant 0 : index
    %c0_14 = arith.constant 0 : index
    %36 = vector.load %arg4[%c0_13, %c0_14] : memref<16x128xf32, #tpu.memory_space<vmem>>, vector<16x128xf32>
    %37 = arith.mulf %35, %36 : vector<16x128xf32>
    %c0_15 = arith.constant 0 : index
    %c0_16 = arith.constant 0 : index
    %c0_17 = arith.constant 0 : index
    %38 = vector.load %arg5[%c0_15, %c0_16, %c0_17] : memref<1x16x128xf32, #tpu.memory_space<vmem>>, vector<1x16x128xf32>
    %39 = vector.shape_cast %38 : vector<1x16x128xf32> to vector<16x128xf32>
    %40 = vector.shape_cast %37 : vector<16x128xf32> to vector<1x16x128xf32>
    tpu.vector_store %arg5[%c0_15, %c0_16, %c0_17], %40 {strides = array<i32>} : memref<1x16x128xf32, #tpu.memory_space<vmem>>, vector<1x16x128xf32>,
    return
  }
  func.func @transform_0(%arg0: i32) -> (i32, i32, i32) {
    %c0_i32 = arith.constant 0 : i32
    %c0_i32_0 = arith.constant 0 : i32
    %c0_i32_1 = arith.constant 0 : i32
    return %arg0, %c0_i32, %c0_i32_0 : i32, i32, i32
  }
  func.func @transform_1(%arg0: i32) -> (i32, i32) {
    %c0_i32 = arith.constant 0 : i32
    %c0_i32_0 = arith.constant 0 : i32
    %c0_i32_1 = arith.constant 0 : i32
    return %c0_i32, %c0_i32_0 : i32, i32
  }
  func.func @transform_2(%arg0: i32) -> (i32, i32) {
    %c0_i32 = arith.constant 0 : i32
    %c0_i32_0 = arith.constant 0 : i32
    %c0_i32_1 = arith.constant 0 : i32
    return %c0_i32, %c0_i32_0 : i32, i32
  }
  func.func @transform_3(%arg0: i32) -> (i32, i32) {
    %c0_i32 = arith.constant 0 : i32
    %c0_i32_0 = arith.constant 0 : i32
    %c0_i32_1 = arith.constant 0 : i32
    return %c0_i32, %c0_i32_0 : i32, i32
  }
  func.func @transform_4(%arg0: i32) -> (i32, i32, i32) {
    %c0_i32 = arith.constant 0 : i32
    %c0_i32_0 = arith.constant 0 : i32
    %c0_i32_1 = arith.constant 0 : i32
    return %arg0, %c0_i32, %c0_i32_0 : i32, i32, i32
  }
}

</mosaic_0001>

<bundles_post_ra>
// kernel: tpu_custom_call.1
= control target key start
LH: loop header
LB: loop body
LE: loop exit
PB: predicated region body
PF: predicated region fallthrough
CT: control target
= control target key end

     0   :  { %9 = vsyncpa [#allocation4], 0  ;;  %s2587_s0 = inlined_call_operand.vmem [shape: f32[2,128,64], index: 0, kind: input, shape index: {}]   ;;  %s2588_s1 = inlined_call_operand.vmem [shape: bf16[128,128], index: 1, kind: input, shape index: {}]   ;;  %s2589_s2 = inlined_call_operand.vmem [shape: f32[1,128], index: 2, kind: input, shape index: {}]   ;;  %s2590_s3 = inlined_call_operand.vmem [shape: f32[16,128], index: 3, kind: input, shape index: {}]   ;;  %s2591_s4 = inlined_call_operand.hbm [shape: f32[2,16,128], index: 4, kind: output, shape index: {}]  }
   0x1   :  { %11 = vsyncpa [#allocation4 + $0x1], 0  ;;  %s1819_s15 = smov 0   ;;  %s1821_s16 = smov 0  }
   0x2   :  { %s1823_s17 = smov 0   ;;  %s1825_s18 = smov 0  }
   0x3 LB: > { %s1840_s19 = sadd.s32 4294967295, %s1785_s18   ;;  %s1441_s20 = sadd.s32 4294967294, %s1785_s18   ;;  %s1785_s18 = sphi %s1825_s18, %s2599_s18   ;;  %s1781_s17 = sphi %s1823_s17, %s2598_s17   ;;  %s1777_s16 = sphi %s1821_s16, %s2597_s16   ;;  %s1773_s15 = sphi %s1819_s15, %s2596_s15  }
   0x4   : > { %s1844_s21 = sadd.s32 1, %s1785_s18   ;;  %s113_s22 = sadd.s32 1, %s1781_s17 }
   0x5   : > { %s110_s23 = ssub.s32 %s1785_s18, %s1844_s21  ;;  %p123_p0 = scmp.ne.s32.totalorder %s1781_s17, %s1777_s16 }
   0x6   : > { %p111_p1 = scmp.eq.s32.totalorder %s110_s23, 0  ;;  %p124_p2 = scmp.eq.s32.totalorder %s1840_s19, 1 }
   0x7   : > { %p129_p3 = scmp.ne.s32.totalorder %s1777_s16, %s1773_s15  ;;  %p130_p4 = scmp.eq.s32.totalorder %s1441_s20, 1 }
   0x8   : > { %s1855_s24 = scalar_select %p111_p1, %s1781_s17, %s113_s22  }
   0x9   : > { %p1857_p5 = por %p124_p2, %p123_p0  ;;  %p1861_p6 = por %p130_p4, %p129_p3 }
   0xa   : > { %p1444_p7 = scmp.ge.s32.totalorder %s1785_s18, 1  ;;  %p165_p8 = scmp.lt.s32.totalorder %s1785_s18, 3 }
   0xc   : > { %p166_p9 = pnand %p1444_p7, %p165_p8 }
   0xd   : > { %p191_p10 = scmp.lt.s32.totalorder (!%p166_p9), %s1840_s19, 1  ;;  %s1789_s6 = smov (!%p166_p9), 64  }
   0xe   : > { %169 = sbr.rel (%p166_p9) target bundleno = 908 (0x38c), region = 36  ;;  %s1790_s7 = smov (!%p166_p9), 96  }
   0xf   : > { %s1791_s10 = smov (!%p166_p9), 16   ;;  %s188_s11 = sand.u32 (!%p166_p9), 1, %s1777_s16  }
  0x10   : > { %s1445_s12 = sshll.u32 (!%p166_p9), %s188_s11, 4  ;;  %s1498_s20 = sshll.u32 (!%p166_p9), %s1840_s19, 4 }
  0x11   : > { %s190_s22 = scalar_lea.vmem (!%p166_p9), [#allocation3], %s1445_s12  ;;  %s1743_s12 = scalar_lea.hbm (!%p166_p9), %s2591_s4, 32 }
  0x12   : > { %s1376_s29 = sshll.u32 (!%p166_p9), %s190_s22, 4  ;;  %s1377_s29 = int_to_ptr.vmem [resolvable:$true] %s1376_s29 }
  0x13   : > { %s192_s27 = scalar_select %p191_p10, %s1840_s19, 1  ;;  %v1497_v18 = vld [vmem:[%s2588_s1 + $0x38] sm:$0xff]  ;;  %v1496_v19 = vld [vmem:[%s2588_s1 + $0x30] sm:$0xff]  ;;  %v1495_v20 = vld [vmem:[%s2588_s1 + $0x28] sm:$0xff]  ;;  %vm470_vm0 = vcmask 1046528   ;;  %v1787_v34 = vmov 0.0  }
  0x14   : > { %304 = vmatpush.bf16.msra.mxu0 %v1497_v18  ;;  %1499 = vmatpush.bf16.msra.mxu2 %v1497_v18  ;;  %v1494_v23 = vld [vmem:[%s2588_s1 + $0x20] sm:$0xff]  ;;  %v1493_v25 = vld [vmem:[%s2588_s1 + $0x18] sm:$0xff]  ;;  %v1492_v26 = vld [vmem:[%s2588_s1 + $0x10] sm:$0xff]  ;;  %347 = vst [vmem:[#allocation2 + $0x8] sm:$0xff] %v1787_v34  ;;  %v487_v35 = vrot.slane %v1787_v34, 1  ;;  %v591_v37 = vrot.slane %v1787_v34, 2 }
  0x15   : > { %s1489_s28 = sshll.u32 %s192_s27, 7  ;;  %1500 = vmatpush.bf16.msra.mxu3 %v1497_v18  ;;  %v1491_v27 = vld [vmem:[%s2588_s1 + $0x8] sm:$0xff]  ;;  %v1490_v30 = vld [vmem:[%s2588_s1] sm:$0xff]  ;;  %333 = vst [vmem:[#allocation2 + $0xb0] sm:$0xff] %v1787_v34  ;;  %vm586_vm1 = vcmask 1045504   ;;  %v727_v48 = vrot.slane %v1787_v34, 3 }
  0x16   : > { %s1872_s5 = scalar_lea.vmem %s2587_s0, %s1489_s28  ;;  %v1571_v36 = vpack.i.bf16 %v487_v35, %v487_v35  ;;  %334 = vst [vmem:[#allocation2] sm:$0xff] %v1787_v34  ;;  %v1591_v47 = vpack.i.bf16 %v591_v37, %v591_v37  ;;  %vm702_vm2 = vcmask 1044480   ;;  %v937_v59 = vrot.slane %v1787_v34, 5  ;;  %s1375_s28 = scalar_lea.hbm %s2591_s4, %s1498_s20 }
  0x17   : > { %v196_v0 = vld [vmem:[%s1872_s5] sm:$0xff]  ;;  %v197_v1 = vld [vmem:[%s1872_s5 + $0x8] sm:$0xff]  ;;  %v198_v3 = vld [vmem:[%s1872_s5 + $0x10] sm:$0xff]  ;;  %335 = vst [vmem:[#allocation2 + $0x10] sm:$0xff] %v1787_v34  ;;  %vm914_vm3 = vcmask 1042432   ;;  %vm1143_vm4 = vcmask 1040384  }
  0x18   : > { %v212_v2 = vpack.c.bf16 %v197_v1, %v196_v0  ;;  %v199_v4 = vld [vmem:[%s1872_s5 + $0x18] sm:$0xff]  ;;  %v200_v6 = vld [vmem:[%s1872_s5 + $0x20] sm:$0xff]  ;;  %v201_v7 = vld [vmem:[%s1872_s5 + $0x28] sm:$0xff]  ;;  %305 = vmatpush.bf16.msra.mxu0 %v1496_v19  ;;  %1501 = vmatpush.bf16.msra.mxu2 %v1496_v19  ;;  %357 = vst [vmem:[#allocation2 + $0xd0] sm:$0xff] %v1787_v34  ;;  %vm368_vm5 = vcmask 1041408   ;;  %vm537_vm6 = vcmask 261120  }
  0x19   : > { %v213_v5 = vpack.c.bf16 %v199_v4, %v198_v3  ;;  %v214_v8 = vpack.c.bf16 %v201_v7, %v200_v6  ;;  %v202_v9 = vld [vmem:[%s1872_s5 + $0x30] sm:$0xff]  ;;  %v203_v10 = vld [vmem:[%s1872_s5 + $0x38] sm:$0xff]  ;;  %v204_v12 = vld [vmem:[%s1872_s5 + $0x40] sm:$0xff]  ;;  %1502 = vmatpush.bf16.msra.mxu3 %v1496_v19  ;;  %358 = vst [vmem:[#allocation2 + $0xc0] sm:$0xff] %v1787_v34  ;;  %vm653_vm7 = vcmask 523264   ;;  %vm769_vm8 = vcmask 785408  }
  0x1a   : > { %240 = vxpose.xlu0.c.b16.start [1/8] (narrow) %v212_v2, 64  ;;  %v215_v11 = vpack.c.bf16 %v203_v10, %v202_v9  ;;  %v205_v13 = vld [vmem:[%s1872_s5 + $0x48] sm:$0xff]  ;;  %v206_v15 = vld [vmem:[%s1872_s5 + $0x50] sm:$0xff]  ;;  %v207_v16 = vld [vmem:[%s1872_s5 + $0x58] sm:$0xff]  ;;  %359 = vst [vmem:[#allocation2 + $0x68] sm:$0xff] %v1787_v34  ;;  %vm839_vm9 = vcmask 1043456  }
  0x1b   : > { %v216_v14 = vpack.c.bf16 %v205_v13, %v204_v12  ;;  %v217_v17 = vpack.c.bf16 %v207_v16, %v206_v15  ;;  %v208_v21 = vld [vmem:[%s1872_s5 + $0x60] sm:$0xff]  ;;  %v209_v22 = vld [vmem:[%s1872_s5 + $0x68] sm:$0xff]  ;;  %v210_v28 = vld [vmem:[%s1872_s5 + $0x70] sm:$0xff]  ;;  %v1606_v13 = vpack.i.bf16 %v727_v48, %v727_v48  ;;  %vm1311_vm10 = vcmask 130048   ;;  %s1364_s19 = scalar_lea.sflag [#allocation4], %s188_s11 }
  0x1c   : > { %306 = vmatpush.bf16.msra.mxu0 %v1495_v20  ;;  %1503 = vmatpush.bf16.msra.mxu2 %v1495_v20  ;;  %v218_v24 = vpack.c.bf16 %v209_v22, %v208_v21  ;;  %v211_v29 = vld [vmem:[%s1872_s5 + $0x78] sm:$0xff]  ;;  %s1788_s5 = smov 32   ;;  %v906_v61 = vld [vmem:[#allocation2 + $0xb0] sm:$0xe0] }
  0x1d   : > { %1504 = vmatpush.bf16.msra.mxu3 %v1495_v20  ;;  %v219_v31 = vpack.c.bf16 %v211_v29, %v210_v28  ;;  %1572 = vrot.lane.b32.xlu2 %v1571_v36, %s1788_s5  ;;  %v915_v63 = vrot.slane %v906_v61, 5 }
  0x1e   : > { %v579_v38 = vld [vmem:[#allocation2 + $0x10] sm:$0xfc] }
  0x1f   : > { %v435_v39 = vld [vmem:[#allocation2 + $0x10] sm:$0xfe]  ;;  %v590_v40 = vrot.slane %v579_v38, 2  ;;  %v917_v2 = vsel %vm914_vm3, %v915_v63, %v937_v59 }
  0x20   : > { %307 = vmatpush.bf16.msra.mxu0 %v1494_v23  ;;  %1505 = vmatpush.bf16.msra.mxu2 %v1494_v23  ;;  %v474_v41 = vrot.slane %v435_v39, 1  ;;  %v908_v53 = vld [vmem:[#allocation2 + $0xd0] sm:$0x1f]  ;;  %v1661_v4 = vpack.i.bf16 %v917_v2, %v937_v59 }
  0x21   : > { %1506 = vmatpush.bf16.msra.mxu3 %v1494_v23  ;;  %v592_v43 = vsel %vm586_vm1, %v590_v40, %v591_v37  ;;  %v697_v49 = vld [vmem:[#allocation2 + $0x68] sm:$0x7]  ;;  %v945_v60 = vrot.slane %v908_v53, 5  ;;  %v1137_v0 = vld [vmem:[#allocation2 + $0xd0] sm:$0x7f]  ;;  %v1626_v23 = vpack.i.bf16 %v937_v59, %v937_v59 }
  0x22   : > { %v476_v44 = vsel %vm470_vm0, %v474_v41, %v487_v35  ;;  %v1581_v45 = vpack.i.bf16 %v591_v37, %v592_v43  ;;  %v451_v50 = vld [vmem:[#allocation2 + $0x68] sm:$0x1]  ;;  %v735_v51 = vrot.slane %v697_v49, 3  ;;  %v1174_v6 = vrot.slane %v1137_v0, 7  ;;  %v1023_v16 = vld [vmem:[#allocation2 + $0xd0] sm:$0x3f] }
  0x23   : > { %v1561_v46 = vpack.i.bf16 %v487_v35, %v476_v44  ;;  %v503_v52 = vrot.slane %v451_v50, 1  ;;  %v946_v62 = vsel %vm914_vm3, %v937_v59, %v945_v60  ;;  %v581_v1 = vld [vmem:[#allocation2 + $0x68] sm:$0x3]  ;;  %v695_v20 = vld [vmem:[#allocation2 + $0x10] sm:$0xf8] }
  0x24   : > { %308 = vmatpush.bf16.msra.mxu0 %v1493_v25  ;;  %1507 = vmatpush.bf16.msra.mxu2 %v1493_v25  ;;  %v736_v54 = vsel %vm702_vm2, %v727_v48, %v735_v51  ;;  %v1611_v3 = vpack.i.bf16 %v937_v59, %v946_v62  ;;  %v619_v7 = vrot.slane %v581_v1, 2  ;;  %v706_v21 = vrot.slane %v695_v20, 3 }
  0x25   : > { %1508 = vmatpush.bf16.msra.mxu3 %v1493_v25  ;;  %1582 = vrot.lane.b32.xlu2 %v1581_v45, %s1789_s6  ;;  %v504_v55 = vsel %vm470_vm0, %v487_v35, %v503_v52  ;;  %v1601_v57 = vpack.i.bf16 %v727_v48, %v736_v54  ;;  %v1972_v25 = vld [vmem:[%s2589_s2] ss:$0 sm:$0xff] }
  0x26   : > { %1562 = vrot.lane.b32.xlu1 %v1561_v46, %s1788_s5  ;;  %v1576_v58 = vpack.i.bf16 %v504_v55, %v487_v35  ;;  %v620_v9 = vsel %vm586_vm1, %v591_v37, %v619_v7  ;;  %v708_v22 = vsel %vm702_vm2, %v706_v21, %v727_v48 }
  0x28   : > { %309 = vmatpush.bf16.msra.mxu0 %v1492_v26  ;;  %1509 = vmatpush.bf16.msra.mxu2 %v1492_v26 }
  0x29   : > { %1510 = vmatpush.bf16.msra.mxu3 %v1492_v26 }
  0x2a   : > { %241 = vxpose.xlu0.c.b16.cont [2/8] (narrow) %v213_v5, 64  ;;  %v1939_v5 = vrot.slane %v1787_v34, 7 }
  0x2c   : > { %310 = vmatpush.bf16.msra.mxu0 %v1491_v27  ;;  %1511 = vmatpush.bf16.msra.mxu2 %v1491_v27  ;;  %v1631_v12 = vpack.i.bf16 %v1939_v5, %v727_v48 }
  0x2d   : > { %1512 = vmatpush.bf16.msra.mxu3 %v1491_v27  ;;  %1592 = vrot.lane.b32.xlu2 %v1591_v47, %s1789_s6 }
  0x2e   : > { %1567 = vrot.lane.b32.xlu1 %v1571_v36, %s1788_s5 }
  0x30   : > { %311 = vmatpush.bf16.msra.mxu0 %v1490_v30  ;;  %1513 = vmatpush.bf16.msra.mxu2 %v1490_v30 }
  0x31   : > { %1514 = vmatpush.bf16.msra.mxu3 %v1490_v30 }
  0x35   : > { %1602 = vrot.lane.b32.xlu2 %v1601_v57, %s1790_s7 }
  0x36   : > { %1577 = vrot.lane.b32.xlu1 %v1576_v58, %s1788_s5 }
  0x3a   : > { %242 = vxpose.xlu0.c.b16.cont [3/8] (narrow) %v214_v8, 64  ;;  %v1175_v8 = vsel %vm1143_vm4, %v1939_v5, %v1174_v6  ;;  %v1666_v6 = vpack.i.bf16 %v1939_v5, %v1939_v5 }
  0x3b   : > { %v1621_v10 = vpack.i.bf16 %v1175_v8, %v727_v48 }
  0x3d   : > { %1612 = vrot.lane.b32.xlu2 %v1611_v3, %s1788_s5 }
  0x3e   : > { %1587 = vrot.lane.b32.xlu1 %v1591_v47, %s1789_s6 }
  0x45   : > { %1622 = vrot.lane.b32.xlu2 %v1621_v10, %s1790_s7 }
  0x4a   : > { %243 = vxpose.xlu0.c.b16.cont [4/8] (narrow) %v215_v11, 64  ;;  %v1596_v11 = vpack.i.bf16 %v620_v9, %v591_v37 }
  0x4c   : > { %1597 = vrot.lane.b32.xlu1 %v1596_v11, %s1789_s6 }
  0x4d   : > { %1632 = vrot.lane.b32.xlu2 %v1631_v12, %s1790_s7 }
  0x54   : > { %1607 = vrot.lane.b32.xlu1 %v1606_v13, %s1790_s7 }
  0x5a   : > { %244 = vxpose.xlu0.c.b16.cont [5/8] (narrow) %v216_v14, 64  ;;  %v1951_v14 = vrot.slane %v1787_v34, 6 }
  0x5c   : > { %v1636_v15 = vpack.i.bf16 %v1951_v14, %v1951_v14 }
  0x5e   : > { %1637 = vrot.lane.b32.xlu2 %v1636_v15, %s1789_s6 }
  0x66   : > { %1642 = vrot.lane.b32.xlu2 %v1631_v12, %s1790_s7 }
  0x6a   : > { %245 = vxpose.xlu0.c.b16.cont [6/8] (narrow) %v217_v17, 64  ;;  %v1059_v17 = vrot.slane %v1023_v16, 6 }
  0x6c   : > { %v1060_v18 = vsel %vm368_vm5, %v1951_v14, %v1059_v17 }
  0x6d   : > { %v1616_v19 = vpack.i.bf16 %v1951_v14, %v1060_v18 }
  0x6f   : > { %1617 = vrot.lane.b32.xlu1 %v1616_v19, %s1789_s6 }
  0x77   : > { %1627 = vrot.lane.b32.xlu1 %v1626_v23, %s1788_s5  ;;  %v1975_v29 = vpop.permute.xlu2 %1572 }
  0x7a   : > { %246 = vxpose.xlu0.c.b16.cont [7/8] (narrow) %v218_v24, 64  ;;  %v1651_v24 = vpack.i.bf16 %v1939_v5, %v708_v22 }
  0x7c   : > { %1652 = vrot.lane.b32.xlu2 %v1651_v24, %s1790_s7 }
  0x7f   : > { %1647 = vrot.lane.b32.xlu1 %v1626_v23, %s1788_s5  ;;  %v1981_v39 = vpop.permute.xlu2 %1582 }
  0x84   : > { %1657 = vrot.lane.b32.xlu2 %v1636_v15, %s1789_s6 }
  0x87   : > { %v1993_v49 = vpop.permute.xlu2 %1592 }
  0x8a   : > { %247 = vxpose.xlu0.c.b16.end [8/8] (narrow) %v219_v31, 64 }
  0x8f   : > { %v2014_v1 = vpop.permute.xlu2 %1602 }
  0x97   : > { %v2035_v16 = vpop.permute.xlu2 %1612 }
  0x98   : > { %v2029_v12 = vpop.permute.xlu1 %1562 }
  0xc6   : > { %v248_v32 = vpop.trf.xlu0 }
  0xc7   : > { %312 = vmatmul.bf16.vlgmr.msra.gmra.mxu0 %v248_v32 }
  0xd6   : > { %v249_v33 = vpop.trf.xlu0 }
  0xd7   : > { %317 = vmatmul.bf16.vlgmr.msra.gmra.mxu2 %v249_v33 }
  0xe6   : > { %v250_v42 = vpop.trf.xlu0 }
  0xe7   : > { %322 = vmatmul.bf16.vlgmr.msra.gmra.mxu3 %v250_v42 }
  0xf6   : > { %v251_v56 = vpop.trf.xlu0 }
  0xf7   : > { %327 = vmatmul.bf16.gmra.mxu3 %v251_v56 }
  0xf8   : > { %1662 = vrot.lane.b32.xlu0 %v1661_v4, %s1788_s5 }
 0x100   : > { %1667 = vrot.lane.b32.xlu0 %v1666_v6, %s1790_s7 }
 0x144   : > { %v313_v26 = vpop.f32.mrf.mxu0 }
 0x145   : > { %v314_v27 = vadd.f32 %v1972_v25, %v313_v26  ;;  %v2047_v26 = vpop.permute.xlu1 %1567 }
 0x147   : > { %v369_v28 = vrot.slane %v314_v27, 6 }
 0x149   : > { %393 = vst [vmem:[#allocation2] sm:$0xfc] %v369_v28 }
 0x14c   : > { %v315_v30 = vpop.f32.mrf.mxu0 }
 0x14d   : > { %v316_v31 = vadd.f32 %v1972_v25, %v315_v30 }
 0x14f   : > { %v370_v32 = vrot.slane %v316_v31, 6 }
 0x150   : > { %v434_v33 = vld [vmem:[#allocation2] sm:$0xfe] }
 0x151   : > { %v907_v35 = vld [vmem:[#allocation2] sm:$0xe0]  ;;  %v1979_v36 = vsel %vm368_vm5, %v369_v28, %v370_v32  ;;  %v471_v37 = vrot.slane %v434_v33, 1  ;;  %v2050_v28 = vpop.permute.xlu2 %1622 }
 0x152   : > { %v918_v38 = vrot.slane %v907_v35, 5  ;;  %v472_v40 = vrot.slane %v1979_v36, 1  ;;  %v919_v41 = vrot.slane %v1979_v36, 5  ;;  %v578_v44 = vld [vmem:[#allocation2] sm:$0xfc]  ;;  %v588_v46 = vrot.slane %v1979_v36, 2 }
 0x153   : > { %v587_v45 = vrot.slane %v578_v44, 2  ;;  %v694_v52 = vld [vmem:[#allocation2] sm:$0xf8]  ;;  %v704_v56 = vrot.slane %v1979_v36, 3  ;;  %v1033_v60 = vrot.slane %v1979_v36, 6 }
 0x154   : > { %v473_v42 = vsel %vm470_vm0, %v471_v37, %v472_v40  ;;  %v920_v43 = vsel %vm914_vm3, %v918_v38, %v919_v41  ;;  %v703_v55 = vrot.slane %v694_v52, 3 }
 0x155   : > { %505 = vrot.lane.b32.xlu1 %v473_v42, %s1788_s5  ;;  %951 = vrot.lane.b32.xlu2 %v920_v43, %s1788_s5  ;;  %v589_v50 = vsel %vm586_vm1, %v587_v45, %v588_v46  ;;  %v2064_v42 = vpop.permute.xlu1 %1577 }
 0x156   : > { %v705_v62 = vsel %vm702_vm2, %v703_v55, %v704_v56  ;;  %v1021_v55 = vld [vmem:[#allocation2 + $0xb0] sm:$0xc0] }
 0x15a   : > { %v318_v47 = vpop.f32.mrf.mxu2 }
 0x15b   : > { %v319_v48 = vadd.f32 %v1972_v25, %v318_v47 }
 0x15d   : > { %v372_v51 = vrot.slane %v319_v48, 6  ;;  %621 = vrot.lane.b32.xlu1 %v589_v50, %s1789_s6  ;;  %v2084_v52 = vpop.permute.xlu1 %1587 }
 0x15f   : > { %v1998_v53 = vsel %vm368_vm5, %v370_v32, %v372_v51 }
 0x160   : > { %v477_v54 = vrot.slane %v1998_v53, 1  ;;  %v1037_v57 = vrot.slane %v1998_v53, 6  ;;  %v593_v4 = vrot.slane %v1998_v53, 2  ;;  %v709_v17 = vrot.slane %v1998_v53, 3 }
 0x161   : > { %v923_v27 = vrot.slane %v1998_v53, 5 }
 0x162   : > { %v320_v58 = vpop.f32.mrf.mxu2  ;;  %v478_v59 = vsel %vm470_vm0, %v472_v40, %v477_v54  ;;  %v2011_v63 = vsel %vm368_vm5, %v1033_v60, %v1037_v57  ;;  %v594_v10 = vsel %vm586_vm1, %v588_v46, %v593_v4  ;;  %v710_v21 = vsel %vm702_vm2, %v704_v56, %v709_v17 }
 0x163   : > { %v321_v61 = vadd.f32 %v1972_v25, %v320_v58  ;;  %509 = vrot.lane.b32.xlu2 %v478_v59, %s1788_s5  ;;  %v924_v33 = vsel %vm914_vm3, %v919_v41, %v923_v27  ;;  %v2071_v41 = vpop.permute.xlu2 %1632 }
 0x165   : > { %v374_v0 = vrot.slane %v321_v61, 6  ;;  %737 = vrot.lane.b32.xlu1 %v705_v62, %s1790_s7  ;;  %v1029_v62 = vrot.slane %v1021_v55, 6 }
 0x167   : > { %v2017_v2 = vsel %vm368_vm5, %v372_v51, %v374_v0  ;;  %v1031_v6 = vsel %vm368_vm5, %v1029_v62, %v1951_v14 }
 0x168   : > { %v481_v3 = vrot.slane %v2017_v2, 1  ;;  %v597_v13 = vrot.slane %v2017_v2, 2  ;;  %v1041_v23 = vrot.slane %v2017_v2, 6  ;;  %v713_v40 = vrot.slane %v2017_v2, 3 }
 0x169   : > { %v927_v51 = vrot.slane %v2017_v2, 5 }
 0x16a   : > { %v323_v7 = vpop.f32.mrf.mxu3  ;;  %v482_v8 = vsel %vm470_vm0, %v477_v54, %v481_v3  ;;  %v598_v19 = vsel %vm586_vm1, %v593_v4, %v597_v13  ;;  %v1042_v31 = vsel %vm368_vm5, %v1037_v57, %v1041_v23  ;;  %v714_v46 = vsel %vm702_vm2, %v709_v17, %v713_v40 }
 0x16b   : > { %v324_v9 = vadd.f32 %v1972_v25, %v323_v7  ;;  %513 = vrot.lane.b32.xlu2 %v482_v8, %s1788_s5  ;;  %v928_v54 = vsel %vm914_vm3, %v923_v27, %v927_v51  ;;  %v2089_v57 = vpop.permute.xlu2 %1637  ;;  %v2105_v8 = vpop.permute.xlu1 %1597 }
 0x16d   : > { %v376_v11 = vrot.slane %v324_v9, 6  ;;  %625 = vrot.lane.b32.xlu1 %v594_v10, %s1789_s6  ;;  %v1671_v9 = vpack.i.bf16 %v1031_v6, %v1951_v14 }
 0x16f   : > { %v2033_v15 = vsel %vm368_vm5, %v374_v0, %v376_v11 }
 0x170   : > { %v485_v37 = vrot.slane %v2033_v15, 1  ;;  %v601_v48 = vrot.slane %v2033_v15, 2  ;;  %v931_v59 = vrot.slane %v2033_v15, 5  ;;  %v717_v0 = vrot.slane %v2033_v15, 3 }
 0x171   : > { %v1045_v17 = vrot.slane %v2033_v15, 6 }
 0x172   : > { %v325_v18 = vpop.f32.mrf.mxu3  ;;  %v486_v44 = vsel %vm470_vm0, %v481_v3, %v485_v37  ;;  %v932_v4 = vsel %vm914_vm3, %v927_v51, %v931_v59  ;;  %v718_v7 = vsel %vm702_vm2, %v713_v40, %v717_v0 }
 0x173   : > { %v326_v20 = vadd.f32 %v1972_v25, %v325_v18  ;;  %629 = vrot.lane.b32.xlu2 %v598_v19, %s1789_s6  ;;  %v1022_v19 = vld [vmem:[#allocation2] sm:$0xc0] }
 0x174   : > { %v1032_v14 = vrot.slane %v1022_v19, 6 }
 0x175   : > { %v378_v22 = vrot.slane %v326_v20, 6  ;;  %741 = vrot.lane.b32.xlu1 %v710_v21, %s1790_s7  ;;  %v1046_v20 = vsel %vm368_vm5, %v1041_v23, %v1045_v17 }
 0x177   : > { %v2045_v24 = vsel %vm368_vm5, %v376_v11, %v378_v22  ;;  %v2109_v11 = vpop.permute.xlu2 %1642 }
 0x178   : > { %v1164_v10 = vrot.slane %v2045_v24, 7  ;;  %v721_v27 = vrot.slane %v2045_v24, 3 }
 0x17a   : > { %v328_v30 = vpop.f32.mrf.mxu3 }
 0x17b   : > { %v329_v32 = vadd.f32 %v1972_v25, %v328_v30  ;;  %1073 = vrot.lane.b32.xlu2 %v1042_v31, %s1789_s6  ;;  %v1034_v30 = vsel %vm368_vm5, %v1032_v14, %v1033_v60  ;;  %v2592_v60 = vrot.slane %v1979_v36, 7 }
 0x17d   : > { %v380_v35 = vrot.slane %v329_v32, 6  ;;  %955 = vrot.lane.b32.xlu1 %v924_v33, %s1788_s5  ;;  %v1136_v32 = vld [vmem:[#allocation2] sm:$0x80]  ;;  %v1156_v33 = vrot.slane %v2017_v2, 7 }
 0x17e   : > { %v1147_v40 = vrot.slane %v1136_v32, 7  ;;  %v1564_v32 = vunpack.i.l.bf16 %v2029_v12 }
 0x17f   : > { %v2061_v38 = vsel %vm368_vm5, %v378_v22, %v380_v35  ;;  %v2121_v22 = vpop.permute.xlu1 %1607  ;;  %v2127_v31 = vpop.permute.xlu2 %1652 }
 0x180   : > { %v725_v21 = vrot.slane %v2061_v38, 3  ;;  %v1168_v55 = vrot.slane %v2061_v38, 7 }
 0x182   : > { %v330_v43 = vpop.f32.mrf.mxu3  ;;  %v726_v23 = vsel %vm702_vm2, %v721_v27, %v725_v21 }
 0x183   : > { %v331_v45 = vadd.f32 %v1972_v25, %v330_v43  ;;  %517 = vrot.lane.b32.xlu2 %v486_v44, %s1788_s5  ;;  %v602_v25 = vsel %vm586_vm1, %v597_v13, %v601_v48  ;;  %v1160_v13 = vrot.slane %v2033_v15, 7  ;;  %v939_v43 = vrot.slane %v2061_v38, 5 }
 0x184   : > { %v935_v44 = vrot.slane %v2045_v24, 5 }
 0x185   : > { %v382_v47 = vrot.slane %v331_v45, 6  ;;  %745 = vrot.lane.b32.xlu1 %v714_v46, %s1790_s7  ;;  %v1165_v18 = vsel %vm1143_vm4, %v1160_v13, %v1164_v10  ;;  %v489_v45 = vrot.slane %v2045_v24, 1  ;;  %v1149_v46 = vsel %vm1143_vm4, %v1147_v40, %v2592_v60  ;;  %v811_v60 = vld [vmem:[#allocation2] sm:$0xf0] }
 0x186   : > { %v940_v51 = vsel %vm914_vm3, %v935_v44, %v939_v43 }
 0x187   : > { %v2077_v50 = vsel %vm368_vm5, %v380_v35, %v382_v47  ;;  %401 = vst [vmem:[#allocation2 + $0xc0] sm:$0x3] %v382_v47  ;;  %v1161_v35 = vsel %vm1143_vm4, %v1156_v33, %v1160_v13  ;;  %v2146_v47 = vpop.permute.xlu1 %1617  ;;  %v722_v13 = vsel %vm702_vm2, %v717_v0, %v721_v27  ;;  %v936_v0 = vsel %vm914_vm3, %v931_v59, %v935_v44 }
 0x188   : > { %v943_v56 = vrot.slane %v2077_v50, 5  ;;  %v497_v6 = vrot.slane %v2077_v50, 1  ;;  %v613_v40 = vrot.slane %v2077_v50, 2  ;;  %v1589_v44 = vunpack.i.l.bf16 %v2084_v52 }
 0x18b   : > { %633 = vrot.lane.b32.xlu2 %v602_v25, %s1789_s6  ;;  %v2152_v25 = vpop.permute.xlu2 %1657 }
 0x18d   : > { %959 = vrot.lane.b32.xlu1 %v928_v54, %s1788_s5  ;;  %v490_v54 = vsel %vm470_vm0, %v485_v37, %v489_v45 }
 0x18e   : > { %v909_v58 = vld [vmem:[#allocation2 + $0xc0] sm:$0x1f] }
 0x18f   : > { %v947_v61 = vrot.slane %v909_v58, 5  ;;  %v605_v58 = vrot.slane %v2045_v24, 2  ;;  %v2167_v62 = vpop.permute.xlu1 %1627  ;;  %v580_v59 = vld [vmem:[#allocation2 + $0xc0] sm:$0x3] }
 0x191   : > { %v948_v3 = vsel %vm914_vm3, %v943_v56, %v947_v61  ;;  %v1169_v61 = vsel %vm1143_vm4, %v1164_v10, %v1168_v55  ;;  %v606_v37 = vsel %vm586_vm1, %v601_v48, %v605_v58  ;;  %v1565_v10 = vunpack.i.h.bf16 %v2029_v12 }
 0x192   : > { %979 = vrot.lane.b32.xlu0 %v948_v3, %s1788_s5 }
 0x193   : > { %963 = vrot.lane.b32.xlu2 %v932_v4, %s1788_s5  ;;  %v493_v4 = vrot.slane %v2061_v38, 1 }
 0x195   : > { %749 = vrot.lane.b32.xlu1 %v718_v7, %s1790_s7  ;;  %v450_v7 = vld [vmem:[#allocation2 + $0xc0] sm:$0x1] }
 0x197   : > { %v2186_v19 = vpop.permute.xlu1 %1647 }
 0x19a   : > { %1672 = vrot.lane.b32.xlu0 %v1671_v9, %s1789_s6  ;;  %v498_v9 = vsel %vm470_vm0, %v493_v4, %v497_v6 }
 0x19b   : > { %1196 = vrot.lane.b32.xlu2 %v1165_v18, %s1790_s7  ;;  %v501_v18 = vrot.slane %v450_v7, 1  ;;  %v402_v7 = vld [vmem:[#allocation2] sm:$0xff] }
 0x19d   : > { %1077 = vrot.lane.b32.xlu1 %v1046_v20, %s1789_s6  ;;  %v502_v14 = vsel %vm470_vm0, %v497_v6, %v501_v18  ;;  %v1584_v6 = vunpack.i.l.bf16 %v1981_v39 }
 0x1a2   : > { %1065 = vrot.lane.b32.xlu0 %v1034_v30, %s1789_s6  ;;  %v1569_v30 = vunpack.i.l.bf16 %v2047_v26 }
 0x1a3   : > { %757 = vrot.lane.b32.xlu2 %v726_v23, %s1790_s7 }
 0x1a5   : > { %1192 = vrot.lane.b32.xlu1 %v1161_v35, %s1790_s7  ;;  %v609_v35 = vrot.slane %v2061_v38, 2 }
 0x1aa   : > { %1180 = vrot.lane.b32.xlu0 %v1149_v46, %s1790_s7 }
 0x1ab   : > { %971 = vrot.lane.b32.xlu2 %v940_v51, %s1788_s5 }
 0x1ad   : > { %521 = vrot.lane.b32.xlu1 %v490_v54, %s1788_s5  ;;  %v1049_v54 = vrot.slane %v2045_v24, 6 }
 0x1af   : > { %v2174_v3 = vpop.permute.xlu2 %951 }
 0x1b3   : > { %1200 = vrot.lane.b32.xlu2 %v1169_v61, %s1790_s7  ;;  %v614_v61 = vsel %vm586_vm1, %v609_v35, %v613_v40 }
 0x1b5   : > { %637 = vrot.lane.b32.xlu1 %v606_v37, %s1789_s6  ;;  %v1050_v37 = vsel %vm368_vm5, %v1045_v17, %v1049_v54 }
 0x1bb   : > { %529 = vrot.lane.b32.xlu2 %v498_v9, %s1788_s5 }
 0x1bd   : > { %v2183_v48 = vpop.permute.xlu2 %509  ;;  %753 = vrot.lane.b32.xlu1 %v722_v13, %s1790_s7 }
 0x1be   : > { %v2190_v20 = vsel %vm537_vm6, %v2183_v48, %v1565_v10 }
 0x1c3   : > { %533 = vrot.lane.b32.xlu2 %v502_v14, %s1788_s5  ;;  %v617_v14 = vrot.slane %v580_v59, 2  ;;  %v1654_v59 = vunpack.i.l.bf16 %v2127_v31 }
 0x1c5   : > { %v514_v27 = vpop.permute.xlu2 %513  ;;  %967 = vrot.lane.b32.xlu1 %v936_v0, %s1788_s5  ;;  %v618_v17 = vsel %vm586_vm1, %v613_v40, %v617_v14  ;;  %v1024_v14 = vld [vmem:[#allocation2 + $0xc0] sm:$0x3f] }
 0x1c6   : > { %v540_v23 = vsel %vm537_vm6, %v514_v27, %v1569_v30  ;;  %v566_v12 = vadd.f32 %v514_v27, %v1998_v53 }
 0x1c7   : > { %v506_v46 = vpop.permute.xlu1 %505 }
 0x1c8   : > { %v538_v51 = vsel %vm537_vm6, %v506_v46, %v1564_v32  ;;  %v562_v10 = vadd.f32 %v506_v46, %v402_v7  ;;  %v494_v46 = vsel %vm470_vm0, %v489_v45, %v493_v4 }
 0x1cb   : > { %645 = vrot.lane.b32.xlu2 %v614_v61, %s1789_s6 }
 0x1cd   : > { %v630_v9 = vpop.permute.xlu2 %629  ;;  %1081 = vrot.lane.b32.xlu1 %v1050_v37, %s1789_s6  ;;  %v1660_v37 = vunpack.i.h.bf16 %v2152_v25 }
 0x1ce   : > { %v656_v13 = vsel %vm653_vm7, %v630_v9, %v1589_v44  ;;  %v2217_v18 = vadd.f32 %v630_v9, %v566_v12  ;;  %v2228_v44 = vpop.permute.xlu0 %1662  ;;  %v844_v12 = vrot.slane %v1979_v36, 4 }
 0x1cf   : > { %v2219_v30 = vadd.f32 %v656_v13, %v540_v23  ;;  %v622_v0 = vpop.permute.xlu1 %621  ;;  %v1665_v45 = vunpack.i.h.bf16 %v2228_v44  ;;  %v944_v13 = vsel %vm914_vm3, %v939_v43, %v943_v56  ;;  %v1585_v56 = vunpack.i.h.bf16 %v1981_v39  ;;  %v1138_v39 = vld [vmem:[#allocation2 + $0xc0] sm:$0x7f] }
 0x1d0   : > { %v654_v27 = vsel %vm653_vm7, %v622_v0, %v1584_v6  ;;  %v678_v32 = vadd.f32 %v622_v0, %v562_v10  ;;  %v1570_v0 = vunpack.i.h.bf16 %v2047_v26  ;;  %v564_v43 = vadd.f32 %v2183_v48, %v1979_v36 }
 0x1d1   : > { %v679_v61 = vadd.f32 %v654_v27, %v538_v51  ;;  %v843_v51 = vrot.slane %v811_v60, 4  ;;  %v981_v27 = vsel %vm537_vm6, %v1665_v45, %v2174_v3  ;;  %v1590_v48 = vunpack.i.h.bf16 %v2084_v52 }
 0x1d3   : > { %649 = vrot.lane.b32.xlu2 %v618_v17, %s1789_s6  ;;  %v845_v10 = vsel %vm839_vm9, %v843_v51, %v844_v12  ;;  %v1057_v51 = vrot.slane %v2077_v50, 6 }
 0x1d5   : > { %v1074_v23 = vpop.permute.xlu2 %1073  ;;  %525 = vrot.lane.b32.xlu1 %v494_v46, %s1788_s5  ;;  %v1061_v46 = vrot.slane %v1024_v14, 6 }
 0x1d6   : > { %v2235_v40 = vsel %vm653_vm7, %v1660_v37, %v1074_v23 }
 0x1d7   : > { %v738_v6 = vpop.permute.xlu1 %737 }
 0x1d8   : > { %v770_v4 = vsel %vm769_vm8, %v738_v6, %v1654_v59  ;;  %v2240_v7 = vadd.f32 %v738_v6, %v678_v32  ;;  %v610_v32 = vsel %vm586_vm1, %v605_v58, %v609_v35  ;;  %v1053_v58 = vrot.slane %v2061_v38, 6 }
 0x1d9   : > { %v795_v9 = vadd.f32 %v770_v4, %v679_v61  ;;  %v1062_v6 = vsel %vm368_vm5, %v1057_v51, %v1061_v46 }
 0x1db   : > { %v891_v60 = vadd.f32 %v845_v10, %v795_v9  ;;  %975 = vrot.lane.b32.xlu2 %v944_v13, %s1788_s5  ;;  %v1054_v9 = vsel %vm368_vm5, %v1049_v54, %v1053_v58  ;;  %v696_v13 = vld [vmem:[#allocation2 + $0xc0] sm:$0x7]  ;;  %v1172_v54 = vrot.slane %v2077_v50, 7 }
 0x1dd   : > { %v518_v61 = vpop.permute.xlu2 %517  ;;  %641 = vrot.lane.b32.xlu1 %v610_v32, %s1789_s6  ;;  %v2258_v17 = vadd.f32 %v981_v27, %v891_v60  ;;  %v1644_v60 = vunpack.i.l.bf16 %v2109_v11 }
 0x1de   : > { %v541_v26 = vsel %vm537_vm6, %v518_v61, %v1570_v0  ;;  %v568_v4 = vadd.f32 %v518_v61, %v2017_v2  ;;  %v1176_v0 = vrot.slane %v1138_v39, 7 }
 0x1df   : > { %v626_v23 = vpop.permute.xlu1 %625 }
 0x1e0   : > { %v655_v3 = vsel %vm653_vm7, %v626_v23, %v1585_v56  ;;  %v680_v59 = vadd.f32 %v626_v23, %v564_v43  ;;  %v733_v56 = vrot.slane %v696_v13, 3  ;;  %v1177_v46 = vsel %vm1143_vm4, %v1172_v54, %v1176_v0 }
 0x1e1   : > { %v681_v35 = vadd.f32 %v655_v3, %v2190_v20  ;;  %v729_v23 = vrot.slane %v2077_v50, 3  ;;  %v848_v3 = vrot.slane %v1998_v53, 4 }
 0x1e3   : > { %1093 = vrot.lane.b32.xlu2 %v1062_v6, %s1789_s6  ;;  %v734_v6 = vsel %vm702_vm2, %v729_v23, %v733_v56 }
 0x1e5   : > { %v634_v10 = vpop.permute.xlu2 %633  ;;  %1085 = vrot.lane.b32.xlu1 %v1054_v9, %s1789_s6 }
 0x1e6   : > { %v657_v20 = vsel %vm653_vm7, %v634_v10, %v1590_v48  ;;  %v2278_v14 = vadd.f32 %v634_v10, %v568_v4 }
 0x1e7   : > { %v2280_v27 = vadd.f32 %v657_v20, %v541_v26  ;;  %v742_v52 = vpop.permute.xlu1 %741  ;;  %v1649_v26 = vunpack.i.l.bf16 %v2186_v19  ;;  %v1655_v20 = vunpack.i.h.bf16 %v2127_v31  ;;  %v1575_v31 = vunpack.i.h.bf16 %v1975_v29 }
 0x1e8   : > { %v771_v32 = vsel %vm769_vm8, %v742_v52, %v1644_v60  ;;  %v2283_v61 = vadd.f32 %v742_v52, %v680_v59  ;;  %v1664_v59 = vunpack.i.l.bf16 %v2228_v44  ;;  %v1173_v60 = vsel %vm1143_vm4, %v1168_v55, %v1172_v54 }
 0x1e9   : > { %v797_v43 = vadd.f32 %v771_v32, %v681_v35  ;;  %v849_v35 = vsel %vm839_vm9, %v844_v12, %v848_v3  ;;  %v730_v12 = vsel %vm702_vm2, %v725_v21, %v729_v23  ;;  %v1634_v52 = vunpack.i.l.bf16 %v2071_v41 }
 0x1ea   : > { %v2317_v55 = vrot.slane %v1787_v34, 4  ;;  %v1152_v21 = vrot.slane %v1998_v53, 7  ;;  %v1650_v23 = vunpack.i.h.bf16 %v2186_v19  ;;  %v852_v34 = vrot.slane %v2017_v2, 4 }
 0x1eb   : > { %1208 = vrot.lane.b32.xlu2 %v1177_v46, %s1790_s7  ;;  %v893_v9 = vadd.f32 %v849_v35, %v797_v43 }
 0x1ec   : > { %v853_v19 = vsel %vm839_vm9, %v848_v3, %v852_v34 }
 0x1ed   : > { %v964_v39 = vpop.permute.xlu2 %963  ;;  %765 = vrot.lane.b32.xlu1 %v734_v6, %s1790_s7 }
 0x1ee   : > { %v984_v48 = vsel %vm537_vm6, %v1649_v26, %v964_v39  ;;  %v1157_v39 = vsel %vm1143_vm4, %v1152_v21, %v1156_v33  ;;  %v1135_v33 = vld [vmem:[#allocation2 + $0xb0] sm:$0x80] }
 0x1ef   : > { %v956_v4 = vpop.permute.xlu1 %955 }
 0x1f0   : > { %v982_v10 = vsel %vm537_vm6, %v1664_v59, %v956_v4  ;;  %v1058_v4 = vsel %vm368_vm5, %v1053_v58, %v1057_v51  ;;  %v1144_v58 = vrot.slane %v1135_v33, 7  ;;  %v1579_v33 = vunpack.i.l.bf16 %v2064_v42 }
 0x1f1   : > { %v2299_v13 = vadd.f32 %v982_v10, %v893_v9 }
 0x1f3   : > { %1204 = vrot.lane.b32.xlu2 %v1173_v60, %s1790_s7  ;;  %v2595_v60 = vrot.slane %v1979_v36, 7 }
 0x1f5   : > { %v1197_v0 = vpop.permute.xlu2 %1196  ;;  %761 = vrot.lane.b32.xlu1 %v730_v12, %s1790_s7  ;;  %v1153_v51 = vsel %vm1143_vm4, %v2595_v60, %v1152_v21 }
 0x1f6   : > { %v2314_v32 = vsel %vm769_vm8, %v1655_v20, %v1197_v0  ;;  %v1624_v0 = vunpack.i.l.bf16 %v2050_v28 }
 0x1f7   : > { %v746_v54 = vpop.permute.xlu1 %745 }
 0x1f8   : > { %v772_v56 = vsel %vm769_vm8, %v746_v54, %v1634_v52  ;;  %v798_v43 = vadd.f32 %v746_v54, %v2217_v18  ;;  %v856_v52 = vrot.slane %v2033_v15, 4  ;;  %v1146_v54 = vsel %vm1143_vm4, %v1144_v58, %v1939_v5 }
 0x1f9   : > { %v799_v46 = vadd.f32 %v772_v56, %v2219_v30  ;;  %v1676_v21 = vpack.i.bf16 %v1146_v54, %v1939_v5  ;;  %v1574_v54 = vunpack.i.l.bf16 %v1975_v29  ;;  %v864_v29 = vrot.slane %v2061_v38, 4 }
 0x1fa   : > { %v894_v6 = vadd.f32 %v2317_v55, %v798_v43 }
 0x1fb   : > { %1188 = vrot.lane.b32.xlu2 %v1157_v39, %s1790_s7  ;;  %v895_v9 = vadd.f32 %v853_v19, %v799_v46  ;;  %v857_v46 = vsel %vm839_vm9, %v852_v34, %v856_v52  ;;  %v1645_v39 = vunpack.i.h.bf16 %v2109_v11  ;;  %v868_v11 = vrot.slane %v2077_v50, 4 }
 0x1fc   : > { %v1009_v35 = vadd.f32 %v1650_v23, %v894_v6 }
 0x1fd   : > { %v2331_v18 = vpop.permute.xlu2 %757  ;;  %1089 = vrot.lane.b32.xlu1 %v1058_v4, %s1789_s6 }
 0x1fe   : > { %v2336_v53 = vadd.f32 %v1660_v37, %v1009_v35  ;;  %v1629_v37 = vunpack.i.l.bf16 %v2167_v62  ;;  %v1659_v35 = vunpack.i.l.bf16 %v2152_v25 }
 0x1ff   : > { %v960_v30 = vpop.permute.xlu1 %959 }
 0x200   : > { %v983_v2 = vsel %vm537_vm6, %v1650_v23, %v960_v30 }
 0x201   : > { %v1010_v10 = vadd.f32 %v983_v2, %v895_v9  ;;  %v2377_v2 = vpop.permute.xlu0 %1667 }
 0x202   : > { %v1669_v25 = vunpack.i.l.bf16 %v2377_v2 }
 0x203   : > { %1184 = vrot.lane.b32.xlu2 %v1153_v51, %s1790_s7  ;;  %v2345_v12 = vadd.f32 %v2235_v40, %v1010_v10 }
 0x205   : > { %1069 = vrot.lane.b32.xlu1 %v2011_v63, %s1789_s6  ;;  %v972_v3 = vpop.permute.xlu2 %971  ;;  %s1378_s6 = sshll.u32 %s1375_s28, 4  ;;  %s1379_s6 = int_to_ptr.hbm [resolvable:$true] %s1378_s6 }
 0x206   : > { %v2354_v36 = vsel %vm537_vm6, %v1629_v37, %v972_v3 }
 0x207   : > { %v750_v40 = vpop.permute.xlu1 %749 }
 0x208   : > { %v773_v56 = vsel %vm769_vm8, %v750_v40, %v1624_v0  ;;  %v800_v43 = vadd.f32 %v750_v40, %v2278_v14 }
 0x209   : > { %v801_v63 = vadd.f32 %v773_v56, %v2280_v27 }
 0x20a   : > { %v896_v23 = vadd.f32 %v2317_v55, %v800_v43  ;;  %v1599_v43 = vunpack.i.l.bf16 %v2105_v8 }
 0x20b   : > { %v897_v6 = vadd.f32 %v857_v46, %v801_v63 }
 0x20c   : > { %v1011_v4 = vadd.f32 %v1649_v26, %v896_v23 }
 0x20d   : > { %1677 = vrot.lane.b32.xlu1 %v1676_v21, %s1790_s7  ;;  %v1201_v19 = vpop.permute.xlu2 %1200  ;;  %v1012_v14 = vadd.f32 %v984_v48, %v897_v6  ;;  %v1594_v21 = vunpack.i.l.bf16 %v1993_v49  ;;  %s1737_s7 = sshra.s32 %s1379_s6, 4  ;;  %s1738_s7 = int_to_ptr.hbm [resolvable:$true] %s1737_s7 }
 0x20e   : > { %v1125_v30 = vadd.f32 %v1659_v35, %v1011_v4  ;;  %v2373_v5 = vsel %vm769_vm8, %v1645_v39, %v1201_v19  ;;  %s1739_s8 = scalar_lea.hbm %s1738_s7, 16  ;;  %p1744_p0 = scmp.lt.s32.totalorder %s1738_s7, %s2591_s4 }
 0x20f   : > { %v1078_v27 = vpop.permute.xlu1 %1077  ;;  %p1740_p11 = scmp.ne.s32.totalorder %s1738_s7, %s1739_s8  ;;  %p1745_p1 = scmp.lt.s32.totalorder %s1743_s12, %s1739_s8 }
 0x210   : > { %v1098_v34 = vsel %vm653_vm7, %v1659_v35, %v1078_v27  ;;  %v2387_v58 = vadd.f32 %v1669_v25, %v1125_v30  ;;  %v1580_v35 = vunpack.i.h.bf16 %v2064_v42  ;;  %v1600_v30 = vunpack.i.h.bf16 %v2105_v8 }
 0x211   : > { %v1126_v9 = vadd.f32 %v1098_v34, %v1012_v14  ;;  %p1741_p12 = pnand %p1740_p11, %p1857_p5  ;;  %p1746_p2 = por %p1745_p1, %p1744_p0 }
 0x213   : > { %p1742_p13 = pneg %p1741_p12 }
 0x215   : > { %v2380_v26 = vpop.permute.xlu2 %529  ;;  %p1747_p3 = pnand %p1746_p2, %p1742_p13 }
 0x216   : > { %v544_v48 = vsel %vm537_vm6, %v2380_v26, %v1579_v33 }
 0x217   : > { %v1193_v10 = vpop.permute.xlu1 %1192 }
 0x218   : > { %v1213_v60 = vsel %vm769_vm8, %v1669_v25, %v1193_v10 }
 0x219   : > { %v2385_v51 = vadd.f32 %v1213_v60, %v1126_v9  ;;  %v1610_v9 = vunpack.i.h.bf16 %v2121_v22 }
 0x21b   : > { %v1701_v3 = vpack.i.bf16 %v2385_v51, %v2387_v58 }
 0x21d   : > { %v2391_v0 = vpop.permute.xlu2 %533 }
 0x21e   : > { %v545_v14 = vsel %vm537_vm6, %v2391_v0, %v1580_v35 }
 0x21f   : > { %v522_v40 = vpop.permute.xlu1 %521 }
 0x220   : > { %v542_v56 = vsel %vm537_vm6, %v522_v40, %v1574_v54  ;;  %v570_v27 = vadd.f32 %v522_v40, %v2033_v15  ;;  %v860_v40 = vrot.slane %v2045_v24, 4 }
 0x222   : > { %v861_v35 = vsel %vm839_vm9, %v856_v52, %v860_v40 }
 0x225   : > { %v2396_v63 = vpop.permute.xlu2 %645 }
 0x226   : > { %v660_v46 = vsel %vm653_vm7, %v2396_v63, %v1599_v43  ;;  %v1640_v43 = vunpack.i.h.bf16 %v2089_v57 }
 0x227   : > { %v2401_v23 = vadd.f32 %v660_v46, %v544_v48  ;;  %v638_v6 = vpop.permute.xlu1 %637 }
 0x228   : > { %v658_v4 = vsel %vm653_vm7, %v638_v6, %v1594_v21  ;;  %v686_v33 = vadd.f32 %v638_v6, %v570_v27 }
 0x229   : > { %v687_v19 = vadd.f32 %v658_v4, %v542_v56  ;;  %v1630_v56 = vunpack.i.h.bf16 %v2167_v62 }
 0x22d   : > { %v2409_v34 = vpop.permute.xlu2 %649 }
 0x22e   : > { %v661_v25 = vsel %vm653_vm7, %v2409_v34, %v1600_v30 }
 0x22f   : > { %v2414_v48 = vadd.f32 %v661_v25, %v545_v14  ;;  %v754_v42 = vpop.permute.xlu1 %753 }
 0x230   : > { %v774_v10 = vsel %vm769_vm8, %v754_v42, %v1610_v9  ;;  %v802_v60 = vadd.f32 %v754_v42, %v686_v33 }
 0x231   : > { %v803_v54 = vadd.f32 %v774_v10, %v687_v19 }
 0x232   : > { %v898_v8 = vadd.f32 %v2317_v55, %v802_v60 }
 0x233   : > { %v899_v14 = vadd.f32 %v861_v35, %v803_v54 }
 0x234   : > { %v1013_v21 = vadd.f32 %v1630_v56, %v898_v8 }
 0x235   : > { %v2421_v46 = vpop.permute.xlu2 %975 }
 0x236   : > { %v1127_v6 = vadd.f32 %v1640_v43, %v1013_v21 }
 0x237   : > { %v968_v4 = vpop.permute.xlu1 %967 }
 0x238   : > { %v985_v19 = vsel %vm537_vm6, %v1630_v56, %v968_v4  ;;  %v2429_v30 = vadd.f32 %v1655_v20, %v1127_v6  ;;  %v1595_v56 = vunpack.i.h.bf16 %v1993_v49  ;;  %v1609_v6 = vunpack.i.l.bf16 %v2121_v22 }
 0x239   : > { %v1014_v27 = vadd.f32 %v985_v19, %v899_v14  ;;  %v865_v22 = vsel %vm839_vm9, %v860_v40, %v864_v29 }
 0x23a   : > { %v775_v19 = vsel %vm769_vm8, %v2331_v18, %v1609_v6 }
 0x23d   : > { %v2431_v9 = vpop.permute.xlu2 %1093 }
 0x23f   : > { %v1082_v33 = vpop.permute.xlu1 %1081 }
 0x240   : > { %v1099_v25 = vsel %vm653_vm7, %v1640_v43, %v1082_v33  ;;  %v2447_v43 = vld [vmem:[#allocation2 + $0x8] sm:$0xff] }
 0x241   : > { %v1128_v42 = vadd.f32 %v1099_v25, %v1014_v27 }
 0x243   : > { %v2435_v10 = vadd.f32 %v2314_v32, %v1128_v42 }
 0x245   : > { %v2437_v15 = vpop.permute.xlu2 %1208  ;;  %v1691_v52 = vpack.i.bf16 %v2435_v10, %v2429_v30 }
 0x247   : > { %v526_v60 = vpop.permute.xlu1 %525 }
 0x248   : > { %v543_v20 = vsel %vm537_vm6, %v526_v60, %v1575_v31  ;;  %v572_v8 = vadd.f32 %v526_v60, %v2045_v24  ;;  %v1670_v24 = vunpack.i.h.bf16 %v2377_v2  ;;  %v1639_v60 = vunpack.i.l.bf16 %v2089_v57 }
 0x249   : > { %v573_v32 = vadd.f32 %v2447_v43, %v543_v20 }
 0x24d   : > { %v2443_v54 = vpop.permute.xlu2 %1204 }
 0x24f   : > { %v642_v21 = vpop.permute.xlu1 %641 }
 0x250   : > { %v659_v35 = vsel %vm653_vm7, %v642_v21, %v1595_v56  ;;  %v688_v4 = vadd.f32 %v642_v21, %v572_v8  ;;  %v1238_v8 = vadd.f32 %v1670_v24, %v2336_v53  ;;  %v819_v21 = vld [vmem:[#allocation2 + $0xd0] sm:$0xf] }
 0x251   : > { %v689_v14 = vadd.f32 %v659_v35, %v573_v32 }
 0x252   : > { %v804_v49 = vadd.f32 %v2331_v18, %v688_v4  ;;  %v870_v4 = vrot.slane %v819_v21, 4 }
 0x253   : > { %v805_v27 = vadd.f32 %v775_v19, %v689_v14 }
 0x254   : > { %v900_v33 = vadd.f32 %v2317_v55, %v804_v49  ;;  %v871_v49 = vsel %vm839_vm9, %v2317_v55, %v870_v4  ;;  %v1620_v4 = vunpack.i.h.bf16 %v2146_v47 }
 0x255   : > { %v1189_v25 = vpop.permute.xlu2 %1188  ;;  %v901_v42 = vadd.f32 %v865_v22, %v805_v27  ;;  %v980_v27 = vpop.permute.xlu0 %979 }
 0x256   : > { %v1015_v31 = vadd.f32 %v1629_v37, %v900_v33  ;;  %v1212_v20 = vsel %vm769_vm8, %v1670_v24, %v1189_v25  ;;  %v820_v37 = vld [vmem:[#allocation2 + $0xc0] sm:$0xf]  ;;  %v1614_v33 = vunpack.i.l.bf16 %v2035_v16 }
 0x257   : > { %v1239_v18 = vadd.f32 %v1212_v20, %v2345_v12  ;;  %v1086_v56 = vpop.permute.xlu1 %1085  ;;  %v1016_v2 = vadd.f32 %v2354_v36, %v901_v42  ;;  %v576_v12 = vadd.f32 %v2391_v0, %v2077_v50  ;;  %v1604_v36 = vunpack.i.l.bf16 %v2014_v1 }
 0x258   : > { %v1100_v32 = vsel %vm653_vm7, %v1639_v60, %v1086_v56  ;;  %v1129_v40 = vadd.f32 %v1639_v60, %v1015_v31  ;;  %v872_v19 = vrot.slane %v820_v37, 4  ;;  %v1619_v42 = vunpack.i.l.bf16 %v2146_v47 }
 0x259   : > { %v1130_v6 = vadd.f32 %v1100_v32, %v1016_v2  ;;  %v1706_v35 = vpack.i.bf16 %v1239_v18, %v1238_v8  ;;  %v692_v53 = vadd.f32 %v2409_v34, %v576_v12  ;;  %v988_v60 = vsel %vm537_vm6, %v1614_v33, %v980_v27 }
 0x25a   : > { %v1244_v57 = vadd.f32 %v1645_v39, %v1129_v40  ;;  %v873_v34 = vsel %vm839_vm9, %v868_v11, %v872_v19  ;;  %v574_v31 = vadd.f32 %v2380_v26, %v2061_v38  ;;  %v1605_v20 = vunpack.i.h.bf16 %v2014_v1 }
 0x25b   : > { %v1245_v62 = vadd.f32 %v2373_v5, %v1130_v6  ;;  %v1625_v56 = vunpack.i.h.bf16 %v2050_v28  ;;  %v1102_v2 = vsel %vm653_vm7, %v1619_v42, %v2431_v9  ;;  %v869_v9 = vsel %vm839_vm9, %v864_v29, %v868_v11 }
 0x25d   : > { %v1681_v14 = vpack.i.bf16 %v1245_v62, %v1244_v57  ;;  %v1217_v40 = vsel %vm769_vm8, %v1625_v56, %v2437_v15 }
 0x25f   : > { %v766_v24 = vpop.permute.xlu1 %765  ;;  %1682 = vrot.lane.b32.xlu0 %v1681_v14, %s1791_s10  ;;  %v1673_v14 = vpop.permute.xlu0 %1672 }
 0x260   : > { %v777_v39 = vsel %vm769_vm8, %v766_v24, %v1604_v36  ;;  %v808_v5 = vadd.f32 %v766_v24, %v692_v53  ;;  %v810_v53 = vld [vmem:[#allocation2 + $0xb0] sm:$0xf0] }
 0x261   : > { %v809_v0 = vadd.f32 %v777_v39, %v2414_v48  ;;  %v690_v48 = vadd.f32 %v2396_v63, %v574_v31  ;;  %v1615_v63 = vunpack.i.h.bf16 %v2035_v16  ;;  %v1635_v16 = vunpack.i.h.bf16 %v2071_v41 }
 0x262   : > { %v904_v22 = vadd.f32 %v871_v49, %v808_v5  ;;  %v840_v24 = vrot.slane %v810_v53, 4 }
 0x263   : > { %v905_v25 = vadd.f32 %v873_v34, %v809_v0  ;;  %v987_v15 = vsel %vm537_vm6, %v1615_v63, %v2421_v46  ;;  %v1216_v47 = vsel %vm769_vm8, %v1635_v16, %v2443_v54  ;;  %v892_v54 = vadd.f32 %v2317_v55, %v2283_v61 }
 0x264   : > { %v1019_v50 = vadd.f32 %v1614_v33, %v904_v22  ;;  %v842_v41 = vsel %vm839_vm9, %v840_v24, %v2317_v55  ;;  %v1675_v0 = vunpack.i.h.bf16 %v1673_v14  ;;  %v1674_v33 = vunpack.i.l.bf16 %v1673_v14 }
 0x265   : > { %v1020_v18 = vadd.f32 %v988_v60, %v905_v25  ;;  %v890_v27 = vadd.f32 %v842_v41, %v2240_v7  ;;  %v1007_v30 = vadd.f32 %v1664_v59, %v892_v54  ;;  %v1185_v60 = vpop.permute.xlu2 %1184 }
 0x266   : > { %v1133_v8 = vadd.f32 %v1619_v42, %v1019_v50 }
 0x267   : > { %v762_v32 = vpop.permute.xlu1 %761  ;;  %1707 = vrot.lane.b32.xlu0 %v1706_v35, %s1791_s10  ;;  %v1134_v21 = vadd.f32 %v1102_v2, %v1020_v18  ;;  %v1066_v39 = vpop.permute.xlu0 %1065  ;;  %v1005_v34 = vadd.f32 %v1665_v45, %v890_v27  ;;  %v1121_v61 = vadd.f32 %v1674_v33, %v1007_v30 }
 0x268   : > { %v776_v26 = vsel %vm769_vm8, %v762_v32, %v1605_v20  ;;  %v806_v6 = vadd.f32 %v762_v32, %v690_v48  ;;  %v1248_v1 = vadd.f32 %v1625_v56, %v1133_v8  ;;  %v1095_v10 = vsel %vm653_vm7, %v1675_v0, %v1066_v39 }
 0x269   : > { %v807_v57 = vadd.f32 %v776_v26, %v2401_v23  ;;  %v1249_v28 = vadd.f32 %v1217_v40, %v1134_v21  ;;  %v1119_v7 = vadd.f32 %v1675_v0, %v1005_v34  ;;  %v1120_v42 = vadd.f32 %v1095_v10, %v2258_v17  ;;  %v1357_v0 = vld [vmem:[%s2590_s3] sm:$0xff] }
 0x26a   : > { %v902_v62 = vadd.f32 %v2317_v55, %v806_v6 }
 0x26b   : > { %v903_v35 = vadd.f32 %v869_v9, %v807_v57  ;;  %v1686_v37 = vpack.i.bf16 %v1249_v28, %v1248_v1 }
 0x26c   : > { %v1017_v12 = vadd.f32 %v1615_v63, %v902_v62 }
 0x26d   : > { %1687 = vrot.lane.b32.xlu1 %v1686_v37, %s1791_s10  ;;  %v1018_v23 = vadd.f32 %v987_v15, %v903_v35 }
 0x26e   : > { %v1131_v36 = vadd.f32 %v1620_v4, %v1017_v12 }
 0x26f   : > { %v1090_v38 = vpop.permute.xlu1 %1089  ;;  %v1181_v45 = vpop.permute.xlu0 %1180 }
 0x270   : > { %v1101_v29 = vsel %vm653_vm7, %v1620_v4, %v1090_v38  ;;  %v1246_v19 = vadd.f32 %v1635_v16, %v1131_v36  ;;  %v1250_v16 = vlaneseq }
 0x271   : > { %v1132_v49 = vadd.f32 %v1101_v29, %v1018_v23 }
 0x272   : > { %v1251_v36 = vshrl.u32 %v1250_v16, 7  ;;  %v1254_v53 = vand.u32 127, %v1250_v16 }
 0x273   : > { %v1247_v11 = vadd.f32 %v1216_v47, %v1132_v49 }
 0x274   : > { %v1255_v29 = vmul.u32 4, %v1251_v36  ;;  %v1252_v47 = vadd.s32 8, %v1251_v36 }
 0x275   : > { %1692 = vrot.lane.b32.xlu1 %v1691_v52, %s1791_s10  ;;  %v1696_v46 = vpack.i.bf16 %v1247_v11, %v1246_v19 }
 0x276   : > { %vm1257_vm11 = vcmp.eq.s32.totalorder %v1254_v53, %v1255_v29  ;;  %v1256_v27 = vmul.u32 4, %v1252_v47 }
 0x277   : > { %v1070_v5 = vpop.permute.xlu1 %1069  ;;  %1697 = vrot.lane.b32.xlu2 %v1696_v46, %s1791_s10  ;;  %v1480_v39 = vsel %vm1257_vm11, 1.0, %v2447_v43 }
 0x278   : > { %v1096_v52 = vsel %vm653_vm7, %v1674_v33, %v1070_v5  ;;  %vm1258_vm12 = vcmp.eq.s32.totalorder %v1254_v53, %v1256_v27 }
 0x279   : > { %v1122_v44 = vadd.f32 %v1096_v52, %v2299_v13  ;;  %v1481_v54 = vsel %vm1258_vm12, 1.0, %v2447_v43  ;;  %v1358_v43 = vld [vmem:[%s2590_s3 + $0x8] sm:$0xff] }
 0x27f   : > { %v1678_v22 = vpop.permute.xlu1 %1677  ;;  %1702 = vrot.lane.b32.xlu2 %v1701_v3, %s1791_s10 }
 0x280   : > { %v1680_v55 = vunpack.i.h.bf16 %v1678_v22  ;;  %v1679_v25 = vunpack.i.l.bf16 %v1678_v22 }
 0x282   : > { %v1210_v59 = vsel %vm769_vm8, %v1680_v55, %v1181_v45  ;;  %v1211_v31 = vsel %vm769_vm8, %v1679_v25, %v1185_v60  ;;  %v1234_v50 = vadd.f32 %v1680_v55, %v1119_v7  ;;  %v1236_v20 = vadd.f32 %v1679_v25, %v1121_v61 }
 0x283   : > { %v1235_v18 = vadd.f32 %v1210_v59, %v1120_v42  ;;  %v1237_v56 = vadd.f32 %v1211_v31, %v1122_v44 }
 0x285   : > { %v1716_v51 = vpack.i.bf16 %v1235_v18, %v1234_v50  ;;  %v1711_v58 = vpack.i.bf16 %v1237_v56, %v1236_v20 }
 0x287   : > { %1717 = vrot.lane.b32.xlu2 %v1716_v51, %s1791_s10  ;;  %1712 = vrot.lane.b32.xlu1 %v1711_v58, %s1791_s10 }
 0x2d1   : > { %v1698_v3 = vpop.permute.xlu2 %1697  ;;  %v1683_v17 = vpop.permute.xlu0 %1682 }
 0x2d2   : > { %v1700_v2 = vunpack.i.h.bf16 %v1698_v3  ;;  %v1699_v8 = vunpack.i.l.bf16 %v1698_v3  ;;  %v1685_v21 = vunpack.i.h.bf16 %v1683_v17  ;;  %v1684_v40 = vunpack.i.l.bf16 %v1683_v17 }
 0x2d4   : > { %v1318_v6 = vsel %vm1311_vm10, %v1699_v8, %v1700_v2  ;;  %v1317_v57 = vsel %vm1311_vm10, %v1684_v40, %v1685_v21 }
 0x2d9   : > { %v1703_v1 = vpop.permute.xlu2 %1702  ;;  %v1708_v28 = vpop.permute.xlu0 %1707 }
 0x2da   : > { %v1705_v9 = vunpack.i.h.bf16 %v1703_v1  ;;  %v1704_v62 = vunpack.i.l.bf16 %v1703_v1  ;;  %v1710_v4 = vunpack.i.h.bf16 %v1708_v28  ;;  %v1709_v15 = vunpack.i.l.bf16 %v1708_v28 }
 0x2dc   : > { %v1315_v14 = vsel %vm1311_vm10, %v1704_v62, %v1705_v9  ;;  %v1314_v23 = vsel %vm1311_vm10, %v1709_v15, %v1710_v4 }
 0x2df   : > { %v1688_v48 = vpop.permute.xlu1 %1687 }
 0x2e0   : > { %v1690_v13 = vunpack.i.h.bf16 %v1688_v48  ;;  %v1689_v32 = vunpack.i.l.bf16 %v1688_v48 }
 0x2e1   : > { %v1718_v38 = vpop.permute.xlu2 %1717 }
 0x2e2   : > { %v1319_v26 = vsel %vm1311_vm10, %v1689_v32, %v1690_v13  ;;  %v1720_v19 = vunpack.i.h.bf16 %v1718_v38  ;;  %v1719_v24 = vunpack.i.l.bf16 %v1718_v38 }
 0x2e3   : > { %1342 = vmatpush.msra.mxu1 %v1319_v26 }
 0x2e4   : > { %v1312_v5 = vsel %vm1311_vm10, %v1719_v24, %v1720_v19 }
 0x2e5   : > { %1343 = vmatpush.msra.mxu1 %v1318_v6 }
 0x2e7   : > { %v1693_v63 = vpop.permute.xlu1 %1692  ;;  %1344 = vmatpush.msra.mxu1 %v1317_v57 }
 0x2e8   : > { %v1695_v35 = vunpack.i.h.bf16 %v1693_v63  ;;  %v1694_v37 = vunpack.i.l.bf16 %v1693_v63 }
 0x2ea   : > { %v1316_v12 = vsel %vm1311_vm10, %v1694_v37, %v1695_v35 }
 0x2eb   : > { %1345 = vmatpush.msra.mxu1 %v1316_v12 }
 0x2ed   : > { %1346 = vmatpush.msra.mxu1 %v1315_v14 }
 0x2ef   : > { %1347 = vmatpush.msra.mxu1 %v1314_v23 }
 0x2f9   : > { %v1713_v49 = vpop.permute.xlu1 %1712 }
 0x2fa   : > { %v1715_v11 = vunpack.i.h.bf16 %v1713_v49  ;;  %v1714_v46 = vunpack.i.l.bf16 %v1713_v49 }
 0x2fc   : > { %v1313_v41 = vsel %vm1311_vm10, %v1714_v46, %v1715_v11 }
 0x2fd   : > { %1348 = vmatpush.msra.mxu1 %v1313_v41 }
 0x2ff   : > { %1349 = vmatpush.msra.mxu1 %v1312_v5 }
 0x300   : > { %1482 = vmatmul.msk.f32.vlgmr.msra.gmra.mxu1 %vm653_vm7, %v1480_v39 }
 0x308   : > { %1483 = vmatmul.msk.f32.gmra.mxu1 %vm653_vm7, %v1481_v54 }
 0x37d   : > { %v1351_v33 = vpop.f32.mrf.mxu1 }
 0x37e   : > { %v1359_v34 = vmul.f32 %v1357_v0, %v1351_v33 }
 0x380   : > { %1361 = vst [vmem:[%s190_s22] sm:$0xff] %v1359_v34 }
 0x385   : > { %v1354_v30 = vpop.f32.mrf.mxu1 }
 0x386   : > { %v1360_v10 = vmul.f32 %v1358_v43, %v1354_v30 }
 0x388   : > { %1362 = vst [vmem:[%s190_s22 + $0x8] sm:$0xff] %v1360_v10 }
 0x389   : > { %1750 = shalt.err (!%p1747_p3)
}
 0x38a   : > { %s1792_s11 = smov 128   ;;  %s1793_s20 = smov 8  }
 0x38b   : > { %1515 = dma.vmem_to_hbm [thread:$0]  (%p1857_p5), %s1377_s29, 256, %s1379_s6, %s1364_s19, %s1792_s11, %s1792_s11, %s1793_s20  }
 0x38c PF: > { %p1521_p4 = scmp.ge.s32.totalorder %s1785_s18, 2  ;;  %s1393_s22 = sand.u32 1, %s1773_s15  }
 0x38d   : > { %s1394_s23 = scalar_lea.sflag [#allocation4], %s1393_s22 }
 0x38e   : > { %p1518_p7 = pnand %p1521_p4, %p1861_p6 }
 0x390   : > { %p1519_p8 = pneg %p1518_p7 }
 0x392   : > { %1768 = dma.done.wait (%p1519_p8), %s1394_s23, 256  }
 0x393   : > { %1770 = vsyncadd (%p1519_p8), %s1394_s23, 4294967040  ;;  %p14_p9 = scmp.ge.s32.totalorder %s1844_s21, 4   ;;  %s2596_s15 = smov %s1777_s16 }
 0x394   : > { %s2597_s16 = smov %s1781_s17  ;;  %s2598_s17 = smov %s1855_s24 }
 0x395   : > { %s2599_s18 = smov %s1844_s21  ;;  %16 = sbr.rel (!%p14_p9) target bundleno = 3 (0x3), region = 71 }
 0x39a   :  { %1400 = vsyncpa [#allocation4], 1 }
 0x39b   :  { %1402 = vsyncpa [#allocation4 + $0x1], 1 }

</bundles_post_ra>
